<compile_context>
chip_gen: v6e
topology: v6e:2x2x1
jax: 0.10.0
libtpu: 0.0.40
codegen_flags: <defaults>
</compile_context>

<pallas_src>
import jax
import jax.numpy as jnp
from jax.experimental import pallas as pl
from jax.experimental.pallas import tpu as pltpu

EPS = 1e-5
NEG_SLOPE = 0.2
LANE = 128


def _round_up(n, m):
    return ((n + m - 1) // m) * m


def net_cls_c_kernel(x_ref, w1_ref, gamma_ref, beta_ref, w2_ref, b2_ref, out_ref):
    # ---- Linear 1 (bias-free: b1 cancels under training-mode BatchNorm) ----
    x = x_ref[...]                                                     # (B, in_dim)
    h = jnp.dot(x, w1_ref[...], preferred_element_type=jnp.float32)   # (B, bn_p)

    # ---- BatchNorm1d (training): batch mean, biased variance, eps=1e-5,
    #      affine folded into one fused multiply-add ----
    b = h.shape[0]
    inv_b = 1.0 / b
    mean = jnp.sum(h, axis=0, keepdims=True) * inv_b                   # (1, bn_p)
    centered = h - mean
    var = jnp.sum(centered * centered, axis=0, keepdims=True) * inv_b  # biased
    inv_std = jax.lax.rsqrt(var + EPS)                                 # EUP slot
    scale = gamma_ref[...] * inv_std                                   # (1, bn_p)
    shift = beta_ref[...] - mean * scale                               # (1, bn_p)
    h_norm = h * scale + shift                                         # single FMA

    # ---- LeakyReLU(0.2) ----
    a = jnp.where(h_norm >= 0, h_norm, NEG_SLOPE * h_norm)

    # ---- Linear 2 into a lane-dense (B, out_p) slab ----
    out = jnp.dot(a, w2_ref[...], preferred_element_type=jnp.float32)
    out_ref[...] = (out + b2_ref[...]).astype(out_ref.dtype)


def net_cls_c_forward(x, params):
    """x: (B, in_dim) float32. params: dict of arrays (see init_params).

    Note: params["b1"] is intentionally unused — it has zero effect on the
    output under training-mode BatchNorm (cancelled by mean subtraction).
    """
    w1, gamma, beta, w2, b2 = (params["w1"], params["gamma"], params["beta"],
                               params["w2"], params["b2"])
    B, in_dim = x.shape
    bn = w1.shape[1]
    out_dim = w2.shape[1]

    # Pad the lane (feature) dimensions to multiples of 128 so matmul outputs and
    # the final store are lane-dense.  Padded bottleneck columns stay exactly 0
    # through BN/LeakyReLU (zero w1 cols, zero beta) and hit zero w2 rows, so the
    # sliced result is bit-identical to the unpadded computation.
    bn_p = _round_up(bn, LANE)
    out_p = _round_up(out_dim, LANE)

    w1_p = jnp.pad(w1, ((0, 0), (0, bn_p - bn)))
    gamma_p = jnp.pad(gamma, ((0, 0), (0, bn_p - bn)))
    beta_p = jnp.pad(beta, ((0, 0), (0, bn_p - bn)))
    w2_p = jnp.pad(w2, ((0, bn_p - bn), (0, out_p - out_dim)))
    b2_p = jnp.pad(b2, ((0, 0), (0, out_p - out_dim)))

    vmem = pl.BlockSpec(memory_space=pltpu.MemorySpace.VMEM)

    out_padded = pl.pallas_call(
        net_cls_c_kernel,
        out_shape=jax.ShapeDtypeStruct((B, out_p), jnp.float32),
        in_specs=[vmem, vmem, vmem, vmem, vmem, vmem],
        out_specs=vmem,
    )(x, w1_p, gamma_p, beta_p, w2_p, b2_p)

    return out_padded[:, :out_dim]


def init_params(key, in_dim, out_dim, bottle_neck_dim):
    """Deterministic init mimicking PyTorch nn.Linear defaults
    (uniform +/- 1/sqrt(fan_in)); BatchNorm gamma=1, beta=0."""
    k1, k2, k3, k4 = jax.random.split(key, 4)
    bound1 = 1.0 / (in_dim ** 0.5)
    bound2 = 1.0 / (bottle_neck_dim ** 0.5)
    w1 = jax.random.uniform(k1, (in_dim, bottle_neck_dim),
                            minval=-bound1, maxval=bound1, dtype=jnp.float32)
    b1 = jax.random.uniform(k2, (1, bottle_neck_dim),
                            minval=-bound1, maxval=bound1, dtype=jnp.float32)
    w2 = jax.random.uniform(k3, (bottle_neck_dim, out_dim),
                            minval=-bound2, maxval=bound2, dtype=jnp.float32)
    b2 = jax.random.uniform(k4, (1, out_dim),
                            minval=-bound2, maxval=bound2, dtype=jnp.float32)
    gamma = jnp.ones((1, bottle_neck_dim), dtype=jnp.float32)
    beta = jnp.zeros((1, bottle_neck_dim), dtype=jnp.float32)
    return {"w1": w1, "b1": b1, "gamma": gamma, "beta": beta,
            "w2": w2, "b2": b2}


def reference_forward(x, params):
    """Pure-JAX reference (keeps b1, exactly like the PyTorch module)."""
    h = x @ params["w1"] + params["b1"]
    mean = jnp.mean(h, axis=0, keepdims=True)
    var = jnp.mean((h - mean) ** 2, axis=0, keepdims=True)
    h = (h - mean) / jnp.sqrt(var + EPS) * params["gamma"] + params["beta"]
    a = jnp.where(h >= 0, h, NEG_SLOPE * h)
    return a @ params["w2"] + params["b2"]


if __name__ == "__main__":
    B, in_dim, bottle_neck_dim, out_dim = 8, 32, 64, 16

    key = jax.random.PRNGKey(0)
    kx, kp = jax.random.split(key)
    x = jax.random.normal(kx, (B, in_dim), dtype=jnp.float32)
    params = init_params(kp, in_dim, out_dim, bottle_neck_dim)

    out = net_cls_c_forward(x, params)
    out = jax.block_until_ready(out)

    ref = reference_forward(x, params)
    assert out.shape == (B, out_dim)
    assert jnp.allclose(out, ref, atol=1e-4, rtol=1e-4)

    print("KERNEL_OK")
</pallas_src>

<mosaic_0001>
module attributes {stable_mosaic.version = 11 : i64} {
  func.func @net_cls_c_kernel(%arg0: memref<8x32xf32, #tpu.memory_space<vmem>>, %arg1: memref<32x128xf32, #tpu.memory_space<vmem>>, %arg2: memref<1x128xf32, #tpu.memory_space<vmem>>, %arg3: memref<1x128xf32, #tpu.memory_space<vmem>>, %arg4: memref<128x128xf32, #tpu.memory_space<vmem>>, %arg5: memref<1x128xf32, #tpu.memory_space<vmem>>, %arg6: memref<8x128xf32, #tpu.memory_space<vmem>>) attributes {dimension_semantics = [], scalar_prefetch = 0 : i64, scratch_operands = 0 : i64, tpu.core_type = #tpu.core_type<tc>} {
    %c0 = arith.constant 0 : index
    %c0_0 = arith.constant 0 : index
    %0 = vector.load %arg0[%c0, %c0_0] : memref<8x32xf32, #tpu.memory_space<vmem>>, vector<8x32xf32>
    %c0_1 = arith.constant 0 : index
    %c0_2 = arith.constant 0 : index
    %1 = vector.load %arg1[%c0_1, %c0_2] : memref<32x128xf32, #tpu.memory_space<vmem>>, vector<32x128xf32>
    %cst = arith.constant dense<0.000000e+00> : vector<8x128xf32>
    %2 = tpu.matmul %0, %1, %cst {dimension_numbers = #tpu.dot_dimension_numbers<[1], [0], [0], [1], [0, 0, 1, 1], [], []>} : vector<8x32xf32>, vector<32x128xf32>, vector<8x128xf32> -> vector<8x128xf32>
    %cst_3 = arith.constant dense<0.000000e+00> : vector<128xf32>
    %3 = vector.multi_reduction <add>, %2, %cst_3 [0] : vector<8x128xf32> to vector<128xf32>
    %4 = vector.shape_cast %3 : vector<128xf32> to vector<1x128xf32>
    %cst_4 = arith.constant 1.250000e-01 : f32
    %5 = vector.broadcast %cst_4 : f32 to vector<1x128xf32>
    %6 = arith.mulf %4, %5 : vector<1x128xf32>
    %7 = vector.broadcast %6 : vector<1x128xf32> to vector<8x128xf32>
    %8 = arith.subf %2, %7 : vector<8x128xf32>
    %9 = arith.mulf %8, %8 : vector<8x128xf32>
    %cst_5 = arith.constant dense<0.000000e+00> : vector<128xf32>
    %10 = vector.multi_reduction <add>, %9, %cst_5 [0] : vector<8x128xf32> to vector<128xf32>
    %11 = vector.shape_cast %10 : vector<128xf32> to vector<1x128xf32>
    %cst_6 = arith.constant 1.250000e-01 : f32
    %12 = vector.broadcast %cst_6 : f32 to vector<1x128xf32>
    %13 = arith.mulf %11, %12 : vector<1x128xf32>
    %cst_7 = arith.constant 9.99999974E-6 : f32
    %14 = vector.broadcast %cst_7 : f32 to vector<1x128xf32>
    %15 = arith.addf %13, %14 : vector<1x128xf32>
    %16 = math.rsqrt %15 : vector<1x128xf32>
    %c0_8 = arith.constant 0 : index
    %c0_9 = arith.constant 0 : index
    %17 = vector.load %arg2[%c0_8, %c0_9] : memref<1x128xf32, #tpu.memory_space<vmem>>, vector<1x128xf32>
    %18 = arith.mulf %17, %16 : vector<1x128xf32>
    %c0_10 = arith.constant 0 : index
    %c0_11 = arith.constant 0 : index
    %19 = vector.load %arg3[%c0_10, %c0_11] : memref<1x128xf32, #tpu.memory_space<vmem>>, vector<1x128xf32>
    %20 = arith.mulf %6, %18 : vector<1x128xf32>
    %21 = arith.subf %19, %20 : vector<1x128xf32>
    %22 = vector.broadcast %18 : vector<1x128xf32> to vector<8x128xf32>
    %23 = arith.mulf %2, %22 : vector<8x128xf32>
    %24 = vector.broadcast %21 : vector<1x128xf32> to vector<8x128xf32>
    %25 = arith.addf %23, %24 : vector<8x128xf32>
    %cst_12 = arith.constant 0.000000e+00 : f32
    %26 = vector.broadcast %cst_12 : f32 to vector<8x128xf32>
    %27 = arith.cmpf oge, %25, %26 : vector<8x128xf32>
    %cst_13 = arith.constant 2.000000e-01 : f32
    %28 = vector.broadcast %cst_13 : f32 to vector<8x128xf32>
    %29 = arith.mulf %28, %25 : vector<8x128xf32>
    %30 = arith.select %27, %25, %29 : vector<8x128xi1>, vector<8x128xf32>
    %c0_14 = arith.constant 0 : index
    %c0_15 = arith.constant 0 : index
    %31 = vector.load %arg4[%c0_14, %c0_15] : memref<128x128xf32, #tpu.memory_space<vmem>>, vector<128x128xf32>
    %cst_16 = arith.constant dense<0.000000e+00> : vector<8x128xf32>
    %32 = tpu.matmul %30, %31, %cst_16 {dimension_numbers = #tpu.dot_dimension_numbers<[1], [0], [0], [1], [0, 0, 1, 1], [], []>} : vector<8x128xf32>, vector<128x128xf32>, vector<8x128xf32> -> vector<8x128xf32>
    %c0_17 = arith.constant 0 : index
    %c0_18 = arith.constant 0 : index
    %33 = vector.load %arg5[%c0_17, %c0_18] : memref<1x128xf32, #tpu.memory_space<vmem>>, vector<1x128xf32>
    %34 = vector.broadcast %33 : vector<1x128xf32> to vector<8x128xf32>
    %35 = arith.addf %32, %34 : vector<8x128xf32>
    %c0_19 = arith.constant 0 : index
    %c0_20 = arith.constant 0 : index
    %36 = vector.load %arg6[%c0_19, %c0_20] : memref<8x128xf32, #tpu.memory_space<vmem>>, vector<8x128xf32>
    tpu.vector_store %arg6[%c0_19, %c0_20], %35 {strides = array<i32>} : memref<8x128xf32, #tpu.memory_space<vmem>>, vector<8x128xf32>,
    return
  }
}

</mosaic_0001>

<bundles_post_ra>
// kernel: tpu_custom_call.1
= control target key start
LH: loop header
LB: loop body
LE: loop exit
PB: predicated region body
PF: predicated region fallthrough
CT: control target
= control target key end

     0   :  { %11 = vsyncpa [#allocation3], 0  ;;  %s544_s0 = inlined_call_operand.hbm [shape: f32[8,32], index: 0, kind: input, shape index: {}]   ;;  %s545_s1 = inlined_call_operand.hbm [shape: f32[32,128], index: 1, kind: input, shape index: {}]   ;;  %s546_s2 = inlined_call_operand.vmem [shape: f32[1,128], index: 2, kind: input, shape index: {}]   ;;  %s547_s3 = inlined_call_operand.vmem [shape: f32[1,128], index: 3, kind: input, shape index: {}]   ;;  %s548_s4 = inlined_call_operand.hbm [shape: f32[128,128], index: 4, kind: input, shape index: {}]   ;;  %s549_s5 = inlined_call_operand.vmem [shape: f32[1,128], index: 5, kind: input, shape index: {}]   ;;  %s550_s6 = inlined_call_operand.hbm [shape: f32[8,128], index: 6, kind: output, shape index: {}]  }
   0x1   :  { %12 = vsyncpa [#allocation6], 0 }
   0x2   :  { %13 = vsyncpa [#allocation4], 0  ;;  %s458_s21 = smov [#allocation5]  }
   0x3   :  { %s29_s22 = sshll.u32 %s458_s21, 4  ;;  %s30_s22 = int_to_ptr.vmem [resolvable:$true] %s29_s22 }
   0x4   :  { %s380_s23 = scalar_lea.vmem %s30_s22, 512  ;;  %p385_p1 = scmp.lt.s32.totalorder %s30_s22, %s30_s22 }
   0x5   :  { %p381_p0 = scmp.ne.s32.totalorder %s30_s22, %s380_s23  ;;  %p386_p2 = scmp.lt.s32.totalorder %s380_s23, %s380_s23 }
   0x7   :  { %p387_p3 = por %p386_p2, %p385_p1 }
   0x9   :  { %p388_p4 = pnand %p387_p3, %p381_p0 }
   0xb   :  { %391 = shalt.err (!%p388_p4)
}
   0xc   :  { %s459_s24 = smov 128   ;;  %s460_s25 = smov 8  }
   0xd   :  { %35 = dma.hbm_to_vmem [thread:$0]  %s545_s1, 512, %s30_s22, [#allocation6], %s459_s24, %s459_s24, %s460_s25  }
   0xe   :  { %s461_s28 = smov [#allocation2]   ;;  %s462_s30 = smov [#allocation7]  }
   0xf   :  { %s20_s29 = sshll.u32 %s461_s28, 4  ;;  %s45_s7 = sshll.u32 %s462_s30, 4  ;;  %s21_s29 = int_to_ptr.vmem [resolvable:$true] %s20_s29  ;;  %s46_s7 = int_to_ptr.vmem [resolvable:$true] %s45_s7 }
  0x10   :  { %s400_s8 = scalar_lea.vmem %s21_s29, 128  ;;  %p405_p6 = scmp.lt.s32.totalorder %s21_s29, %s21_s29 }
  0x11   :  { %p401_p5 = scmp.ne.s32.totalorder %s21_s29, %s400_s8  ;;  %p406_p7 = scmp.lt.s32.totalorder %s400_s8, %s400_s8 }
  0x13   :  { %p407_p8 = por %p406_p7, %p405_p6 }
  0x15   :  { %p408_p9 = pnand %p407_p8, %p401_p5 }
  0x17   :  { %411 = shalt.err (!%p408_p9)
}
  0x18   :  { %23 = dma.hbm_to_vmem [thread:$0]  %s544_s0, 128, %s21_s29, [#allocation3]  }
  0x19   :  { %s420_s11 = scalar_lea.vmem %s46_s7, 2048  ;;  %p425_p11 = scmp.lt.s32.totalorder %s46_s7, %s46_s7 }
  0x1a   :  { %p421_p10 = scmp.ne.s32.totalorder %s46_s7, %s420_s11  ;;  %p426_p12 = scmp.lt.s32.totalorder %s420_s11, %s420_s11 }
  0x1c   :  { %p427_p13 = por %p426_p12, %p425_p11 }
  0x1e   :  { %p428_p0 = pnand %p427_p13, %p421_p10 }
  0x20   :  { %431 = shalt.err (!%p428_p0)
}
  0x21   :  { %51 = dma.hbm_to_vmem [thread:$0]  %s548_s4, 2048, %s46_s7, [#allocation6], %s459_s24, %s459_s24, %s460_s25  }
  0x22   :  { %452 = dma.done.wait [#allocation3], 128  }
  0x23   :  { %453 = vsyncadd [#allocation3], 4294967168 }
  0x24   :  { %454 = dma.done.wait [#allocation6], 2560  }
  0x25   :  { %455 = vsyncadd [#allocation6], 4294964736  ;;  %v463_v0 = vmov 0.0   ;;  %vm464_vm0 = vmmov 0   ;;  %v67_v1 = vld [vmem:[#allocation5 + $0x18] sm:$0xff]  ;;  %v66_v2 = vld [vmem:[#allocation5 + $0x10] sm:$0xff]  ;;  %v166_v41 = vlaneseq }
  0x26   :  { %316 = vmatprep.subr.mxu0 %v463_v0  ;;  %324 = vmatprep.mubr.msk.f32.mxu0 %vm464_vm0, %v463_v0  ;;  %v65_v3 = vld [vmem:[#allocation5 + $0x8] sm:$0xff]  ;;  %v64_v4 = vld [vmem:[#allocation5] sm:$0xff]  ;;  %v63_v5 = vld [vmem:[#allocation2] sm:$0xff]  ;;  %vm68_vm1 = vcmask 261120  }
  0x27   :  { %327 = vmatprep.subr.mxu1 %v463_v0  ;;  %359 = vmatprep.mubr.msk.f32.mxu1 %vm464_vm0, %v463_v0  ;;  %v197_v6 = vld [vmem:[#allocation7 + $0x78] sm:$0xff]  ;;  %v196_v7 = vld [vmem:[#allocation7 + $0x70] sm:$0xff]  ;;  %v195_v8 = vld [vmem:[#allocation7 + $0x68] sm:$0xff]  ;;  %v167_v42 = vshrl.u32 %v166_v41, 7 }
  0x28   :  { %317 = vmatpush3.msra.mxu0 %v67_v1  ;;  %328 = vmatpush3.msra.mxu1 %v197_v6  ;;  %v194_v9 = vld [vmem:[#allocation7 + $0x60] sm:$0xff]  ;;  %v193_v10 = vld [vmem:[#allocation7 + $0x58] sm:$0xff]  ;;  %v192_v11 = vld [vmem:[#allocation7 + $0x50] sm:$0xff] }
  0x29   :  { %318 = vmatprep.subr.mxu0 %v463_v0  ;;  %329 = vmatprep.subr.mxu1 %v463_v0  ;;  %v191_v12 = vld [vmem:[#allocation7 + $0x48] sm:$0xff]  ;;  %v190_v13 = vld [vmem:[#allocation7 + $0x40] sm:$0xff]  ;;  %v189_v14 = vld [vmem:[#allocation7 + $0x38] sm:$0xff]  ;;  %v168_v44 = vsub.s32 0, %v167_v42 }
  0x2a   :  { %319 = vmatpush3.msra.mxu0 %v66_v2  ;;  %330 = vmatpush3.msra.mxu1 %v196_v7  ;;  %v188_v15 = vld [vmem:[#allocation7 + $0x30] sm:$0xff]  ;;  %v187_v16 = vld [vmem:[#allocation7 + $0x28] sm:$0xff]  ;;  %v186_v17 = vld [vmem:[#allocation7 + $0x20] sm:$0xff] }
  0x2b   :  { %320 = vmatprep.subr.mxu0 %v463_v0  ;;  %331 = vmatprep.subr.mxu1 %v463_v0  ;;  %v185_v18 = vld [vmem:[#allocation7 + $0x18] sm:$0xff]  ;;  %v184_v19 = vld [vmem:[#allocation7 + $0x10] sm:$0xff]  ;;  %v183_v20 = vld [vmem:[#allocation7 + $0x8] sm:$0xff] }
  0x2c   :  { %321 = vmatpush3.msra.mxu0 %v65_v3  ;;  %332 = vmatpush3.msra.mxu1 %v195_v8  ;;  %v182_v21 = vld [vmem:[#allocation7] sm:$0xff]  ;;  %v160_v43 = vld [vmem:[%s546_s2] sm:$0x1]  ;;  %s465_s2 = smov [#allocation8]  }
  0x2d   :  { %322 = vmatprep.subr.mxu0 %v463_v0  ;;  %333 = vmatprep.subr.mxu1 %v463_v0  ;;  %v162_v47 = vld [vmem:[%s547_s3] sm:$0x1]  ;;  %s282_s17 = sshll.u32 %s465_s2, 4  ;;  %s283_s17 = int_to_ptr.vmem [resolvable:$true] %s282_s17 }
  0x2e   :  { %323 = vmatpush3.msra.mxu0 %v64_v4  ;;  %334 = vmatpush3.msra.mxu1 %v194_v9  ;;  %v293_v56 = vld [vmem:[%s549_s5] ss:$0 sm:$0xff]  ;;  %s432_s3 = scalar_lea.vmem %s283_s17, 128  ;;  %p437_p2 = scmp.lt.s32.totalorder %s283_s17, %s283_s17 }
  0x2f   :  { %325 = vmatmul.mubr.msk.f32.vlgmr.msra.gmra.mxu0 %vm68_vm1, %v63_v5  ;;  %335 = vmatprep.subr.mxu1 %v463_v0  ;;  %p433_p1 = scmp.ne.s32.totalorder %s283_s17, %s432_s3  ;;  %p438_p3 = scmp.lt.s32.totalorder %s432_s3, %s432_s3 }
  0x30   :  { %336 = vmatpush3.msra.mxu1 %v193_v10 }
  0x31   :  { %337 = vmatprep.subr.mxu1 %v463_v0  ;;  %p439_p4 = por %p438_p3, %p437_p2 }
  0x32   :  { %338 = vmatpush3.msra.mxu1 %v192_v11 }
  0x33   :  { %339 = vmatprep.subr.mxu1 %v463_v0  ;;  %p440_p5 = pnand %p439_p4, %p433_p1 }
  0x34   :  { %340 = vmatpush3.msra.mxu1 %v191_v12 }
  0x35   :  { %341 = vmatprep.subr.mxu1 %v463_v0 }
  0x36   :  { %342 = vmatpush3.msra.mxu1 %v190_v13 }
  0x37   :  { %343 = vmatprep.subr.mxu1 %v463_v0 }
  0x38   :  { %344 = vmatpush3.msra.mxu1 %v189_v14 }
  0x39   :  { %345 = vmatprep.subr.mxu1 %v463_v0 }
  0x3a   :  { %346 = vmatpush3.msra.mxu1 %v188_v15 }
  0x3b   :  { %347 = vmatprep.subr.mxu1 %v463_v0 }
  0x3c   :  { %348 = vmatpush3.msra.mxu1 %v187_v16 }
  0x3d   :  { %349 = vmatprep.subr.mxu1 %v463_v0 }
  0x3e   :  { %350 = vmatpush3.msra.mxu1 %v186_v17 }
  0x3f   :  { %351 = vmatprep.subr.mxu1 %v463_v0 }
  0x40   :  { %352 = vmatpush3.msra.mxu1 %v185_v18 }
  0x41   :  { %353 = vmatprep.subr.mxu1 %v463_v0 }
  0x42   :  { %354 = vmatpush3.msra.mxu1 %v184_v19 }
  0x43   :  { %355 = vmatprep.subr.mxu1 %v463_v0 }
  0x44   :  { %356 = vmatpush3.msra.mxu1 %v183_v20 }
  0x45   :  { %357 = vmatprep.subr.mxu1 %v463_v0 }
  0x46   :  { %358 = vmatpush3.msra.mxu1 %v182_v21 }
  0xef   :  { %v138_v22 = vpop.f32.mrf.mxu0 }
  0xf0   :  { %v142_v23 = vrot.slane %v138_v22, 4 }
  0xf1   :  { %v326_v24 = vpop.f32.mrf.mxu0 }
  0xf2   :  { %v143_v25 = vadd.f32 %v142_v23, %v138_v22 }
  0xf4   :  { %v144_v26 = vrot.slane %v143_v25, 2 }
  0xf6   :  { %v145_v27 = vadd.f32 %v144_v26, %v143_v25 }
  0xf8   :  { %v146_v28 = vrot.slane %v145_v27, 1 }
  0xfa   :  { %v147_v29 = vadd.f32 %v146_v28, %v145_v27 }
  0xfc   :  { %v148_v30 = vmul.f32 0.125, %v147_v29 }
  0xfe   :  { %v149_v31 = vsub.f32 %v138_v22, %v148_v30 }
 0x100   :  { %v150_v32 = vmul.f32 %v149_v31, %v149_v31 }
 0x102   :  { %v151_v33 = vrot.slane %v150_v32, 4 }
 0x104   :  { %v152_v34 = vadd.f32 %v151_v33, %v150_v32 }
 0x106   :  { %v153_v35 = vrot.slane %v152_v34, 2 }
 0x108   :  { %v154_v36 = vadd.f32 %v153_v35, %v152_v34 }
 0x10a   :  { %v155_v37 = vrot.slane %v154_v36, 1 }
 0x10c   :  { %v156_v38 = vadd.f32 %v155_v37, %v154_v36 }
 0x10e   :  { %v157_v39 = vmul.f32 0.125, %v156_v38 }
 0x110   :  { %v158_v40 = vadd.f32 1e-05, %v157_v39 }
 0x112   :  { %370 = vrsqrt.f32 %v158_v40 }
 0x11f   :  { %v371_v45 = vpop.eup %370 }
 0x120   :  { %v161_v46 = vmul.f32 %v371_v45, %v160_v43 }
 0x122   :  { %v163_v48 = vmul.f32 %v161_v46, %v148_v30  ;;  %v169_v49 = vrot.slane %v161_v46, %v168_v44 }
 0x124   :  { %v164_v50 = vsub.f32 %v162_v47, %v163_v48  ;;  %v171_v51 = vmul.f32 %v169_v49, %v138_v22 }
 0x126   :  { %v176_v52 = vrot.slane %v164_v50, %v168_v44 }
 0x128   :  { %v178_v53 = vadd.f32 %v176_v52, %v171_v51 }
 0x12a   :  { %vm179_vm2 = vcmp.ge.f32.partialorder %v178_v53, 0.0  ;;  %v180_v54 = vmul.f32 0.2, %v178_v53 }
 0x12c   :  { %v181_v55 = vsel %vm179_vm2, %v178_v53, %v180_v54 }
 0x12d   :  { %360 = vmatmul.mubr.f32.vlgmr.msra.gmra.mxu1 %v181_v55 }
 0x1ed   :  { %v271_v57 = vpop.f32.mrf.mxu1 }
 0x1ee   :  { %v272_v58 = vadd.f32 %v293_v56, %v271_v57 }
 0x1ef   :  { %v361_v59 = vpop.f32.mrf.mxu1 }
 0x1f0   :  { %275 = vst [vmem:[#allocation8] sm:$0xff] %v272_v58 }
 0x1f1   :  { %443 = shalt.err (!%p440_p5)
}
 0x1f2   :  { %285 = dma.vmem_to_hbm [thread:$0]  %s283_s17, 128, %s550_s6, [#allocation4]  }
 0x1f3   :  { %456 = dma.done.wait [#allocation4], 128  }
 0x1f4   :  { %457 = vsyncadd [#allocation4], 4294967168 }
 0x1f5   :  { %289 = vsyncpa [#allocation3], 1 }
 0x1f6   :  { %290 = vsyncpa [#allocation6], 1 }
 0x1f7   :  { %291 = vsyncpa [#allocation4], 1 }

</bundles_post_ra>
